<compile_context>
chip_gen: v6e
topology: v6e:2x2x1
jax: 0.10.0
libtpu: 0.0.40
codegen_flags: <defaults>
</compile_context>

<pallas_src>
import math

import jax
import jax.numpy as jnp
from jax.experimental import pallas as pl
from jax.experimental.pallas import tpu as pltpu


def make_sinusoidal_pe(seq_len: int, d_model: int) -> jnp.ndarray:
    """Standard 'Attention Is All You Need' positional encoding, shape (S, D)."""
    pos = jnp.arange(seq_len, dtype=jnp.float32)[:, None]                  # (S, 1)
    i = jnp.arange(0, d_model, 2, dtype=jnp.float32)[None, :]              # (1, ceil(D/2))
    div = jnp.exp(-math.log(10000.0) * i / d_model)
    angles = pos * div                                                     # (S, ceil(D/2))
    pe = jnp.zeros((seq_len, d_model), dtype=jnp.float32)
    pe = pe.at[:, 0::2].set(jnp.sin(angles))
    pe = pe.at[:, 1::2].set(jnp.cos(angles)[:, : d_model // 2])            # handles odd D
    return pe


def _pick_seq_tile(seq_len: int, target: int = 256) -> int:
    """Largest tile <= target that divides S and keeps the sublane dim a multiple of 8."""
    t = min(target, seq_len)
    for cand in range(t, 0, -1):
        if seq_len % cand == 0 and (cand % 8 == 0 or cand == seq_len):
            return cand
    return seq_len


def input_embedding(ids: jnp.ndarray,
                    emb_table: jnp.ndarray,
                    pe_table: jnp.ndarray,
                    *,
                    seq_tile_target: int = 256) -> jnp.ndarray:
    """ids: (B, S) int; emb_table: (V, D); pe_table: (S, D) f32 -> (B, S, D) f32."""
    B, S = ids.shape
    V, D = emb_table.shape
    assert pe_table.shape == (S, D)

    T = _pick_seq_tile(S, seq_tile_target)     # tokens handled per grid step
    n_seq_tiles = S // T

    def kernel(ids_ref,          # SMEM (B*S,) int32  -- scalar-prefetched token ids
               emb_hbm,          # (V, D) in HBM (pl.ANY), no auto-DMA
               pe_ref,           # VMEM (T, D) f32    -- PE tile for this seq tile
               out_ref,          # VMEM (1, T, D) f32
               gbuf,             # VMEM (2, T, D) scratch -- double-buffered gathered rows
               sems):            # DMA semaphores, one per slot: (2,)
        b = pl.program_id(0)
        st = pl.program_id(1)
        n_st = pl.num_programs(1)
        slot = st % 2

        def issue_tile(tile_st, slot_idx):
            row0 = b * S + tile_st * T
            # All T row-gather DMAs of the tile are issued up front and proceed
            # concurrently; they all signal the slot's single semaphore.
            @pl.loop(0, T)
            def _start(r):
                tid = ids_ref[row0 + r]
                # Defensive clamp: avoid silent OOB HBM read on bad token ids.
                tid = jnp.clip(tid, 0, V - 1)
                pltpu.make_async_copy(emb_hbm.at[tid],
                                      gbuf.at[slot_idx, r],
                                      sems.at[slot_idx]).start()

        # Prime the pipeline at the first seq tile of this batch row.
        @pl.when(st == 0)
        def _():
            issue_tile(0, 0)

        # Prefetch the next seq tile of the same batch row into the other slot
        # *before* waiting on the current one, so its DMAs overlap with the
        # current tile's wait + compute + output writeback.
        @pl.when(st + 1 < n_st)
        def _():
            issue_tile(st + 1, (st + 1) % 2)

        # Wait for all T row copies of the current slot (row-shaped descriptor
        # matches each started copy, so the accounting is exact).
        @pl.loop(0, T)
        def _wait(r):
            pltpu.make_async_copy(emb_hbm.at[0],
                                  gbuf.at[slot, r],
                                  sems.at[slot]).wait()

        out_ref[0] = (gbuf[slot].astype(jnp.float32) + pe_ref[...]).astype(out_ref.dtype)

    return pl.pallas_call(
        kernel,
        out_shape=jax.ShapeDtypeStruct((B, S, D), jnp.float32),
        grid_spec=pltpu.PrefetchScalarGridSpec(
            num_scalar_prefetch=1,                 # ids -> SMEM, visible to index_maps too
            grid=(B, n_seq_tiles),
            in_specs=[
                pl.BlockSpec(memory_space=pl.ANY),                      # emb table stays in HBM
                pl.BlockSpec((T, D), lambda b, s, ids: (s, 0)),         # PE tile follows seq tile
            ],
            out_specs=pl.BlockSpec((1, T, D), lambda b, s, ids: (b, s, 0)),
            scratch_shapes=[
                pltpu.VMEM((2, T, D), emb_table.dtype),  # double-buffered gather slab
                pltpu.SemaphoreType.DMA((2,)),           # one DMA sem per slot
            ]),
        compiler_params=pltpu.CompilerParams(
            # Batch axis may be split across TensorCores; the seq-tile axis
            # carries the manual double-buffer dependency -> "arbitrary".
            dimension_semantics=("parallel", "arbitrary")),
    )(ids.reshape(B * S).astype(jnp.int32), emb_table, pe_table)


if __name__ == "__main__":
    # Small, deterministic configuration. D is a multiple of 128 so output
    # stores are lane-dense; S = 2 seq tiles per batch row so the cross-tile
    # gather double-buffering path is exercised.
    vocab_size = 512
    embedding_dim = 128
    batch = 2
    seq_len = 256

    key = jax.random.PRNGKey(0)
    k_emb, k_ids = jax.random.split(key)

    # Deterministic parameter init (nn.Embedding default ~ N(0, 1)).
    emb_table = jax.random.normal(k_emb, (vocab_size, embedding_dim),
                                  dtype=jnp.float32)
    pe_table = make_sinusoidal_pe(seq_len, embedding_dim)

    token_ids = jax.random.randint(k_ids, (batch, seq_len), 0, vocab_size,
                                   dtype=jnp.int32)

    out = input_embedding(token_ids, emb_table, pe_table)
    out = jax.block_until_ready(out)

    # Reference check in plain JAX (eval-mode semantics: gather + PE, dropout = identity).
    ref = emb_table[token_ids] + pe_table[None, :, :]
    assert out.shape == (batch, seq_len, embedding_dim)
    assert jnp.allclose(out, ref, atol=1e-5, rtol=1e-5)

    print("KERNEL_OK")
</pallas_src>

<mosaic_0001>
module attributes {stable_mosaic.version = 11 : i64} {
  func.func @kernel(%arg0: i32, %arg1: i32, %arg2: memref<512xi32, #tpu.memory_space<smem>>, %arg3: memref<512x128xf32, #tpu.memory_space<any>>, %arg4: memref<256x128xf32, #tpu.memory_space<vmem>>, %arg5: memref<1x256x128xf32, #tpu.memory_space<vmem>>, %arg6: memref<2x256x128xf32, #tpu.memory_space<vmem>>, %arg7: memref<2x!tpu.dma_semaphore, #tpu.memory_space<semaphore_mem>>) attributes {dimension_semantics = [#tpu.dimension_semantics<parallel>, #tpu.dimension_semantics<arbitrary>], iteration_bounds = array<i64: 2, 1>, scalar_prefetch = 1 : i64, scratch_operands = 2 : i64, tpu.core_type = #tpu.core_type<tc>, window_params = [{}, {transform_indices = @transform_1, window_bounds = array<i64: 256, 128>}, {transform_indices = @transform_2, window_bounds = array<i64: 1, 256, 128>}]} {
    %c2_i32 = arith.constant 2 : i32
    %c0_i32 = arith.constant 0 : i32
    %0 = arith.cmpi eq, %c2_i32, %c0_i32 : i32
    %c1_i32 = arith.constant 1 : i32
    %1 = arith.select %0, %c1_i32, %c2_i32 : i32
    %2 = arith.remsi %arg1, %1 : i32
    %c0_i32_0 = arith.constant 0 : i32
    %3 = arith.cmpi ne, %2, %c0_i32_0 : i32
    %c0_i32_1 = arith.constant 0 : i32
    %4 = arith.cmpi slt, %2, %c0_i32_1 : i32
    %c0_i32_2 = arith.constant 0 : i32
    %5 = arith.cmpi slt, %1, %c0_i32_2 : i32
    %6 = arith.xori %4, %5 : i1
    %7 = arith.andi %6, %3 : i1
    %8 = arith.addi %2, %1 : i32
    %9 = arith.select %7, %8, %2 : i32
    %c0_i32_3 = arith.constant 0 : i32
    %10 = arith.cmpi eq, %arg1, %c0_i32_3 : i32
    %11 = arith.extui %10 : i1 to i32
    %c0_i32_4 = arith.constant 0 : i32
    %12 = arith.cmpi ne, %11, %c0_i32_4 : i32
    scf.if %12 {
      %c256_i32_17 = arith.constant 256 : i32
      %26 = arith.muli %arg0, %c256_i32_17 : i32
      %c0_i32_18 = arith.constant 0 : i32
      %27 = arith.addi %26, %c0_i32_18 : i32
      %c0_i32_19 = arith.constant 0 : i32
      %c256_i32_20 = arith.constant 256 : i32
      %28 = arith.addi %c0_i32_19, %c256_i32_20 : i32
      %c1_i32_21 = arith.constant 1 : i32
      scf.for %arg8 = %c0_i32_19 to %28 step %c1_i32_21  : i32 {
        %c1_i32_23 = arith.constant 1 : i32
        %29 = arith.muli %arg8, %c1_i32_23 : i32
        %c0_i32_24 = arith.constant 0 : i32
        %30 = arith.addi %c0_i32_24, %29 : i32
        %31 = arith.addi %27, %30 : i32
        %32 = arith.index_cast %31 : i32 to index
        %33 = memref.load %arg2[%32] : memref<512xi32, #tpu.memory_space<smem>>
        %c0_i32_25 = arith.constant 0 : i32
        %c511_i32 = arith.constant 511 : i32
        %34 = arith.maxsi %c0_i32_25, %33 : i32
        %35 = arith.minsi %c511_i32, %34 : i32
        %c0_i32_26 = arith.constant 0 : i32
        %c0_i32_27 = arith.constant 0 : i32
        %c0_i32_28 = arith.constant 0 : i32
        %36 = tpu.memref_slice %arg3[%35, %c0_i32_28] : memref<512x128xf32, #tpu.memory_space<any>> -> memref<1x128xf32, #tpu.memory_space<any>>
        %37 = tpu.memref_squeeze %36 : memref<1x128xf32, #tpu.memory_space<any>> -> memref<128xf32, #tpu.memory_space<any>>
        %c0_i32_29 = arith.constant 0 : i32
        %38 = tpu.memref_slice %arg6[%c0_i32_26, %30, %c0_i32_29] : memref<2x256x128xf32, #tpu.memory_space<vmem>> -> memref<1x1x128xf32, #tpu.memory_space<vmem>>
        %39 = tpu.memref_squeeze %38 : memref<1x1x128xf32, #tpu.memory_space<vmem>> -> memref<128xf32, #tpu.memory_space<vmem>>
        %40 = tpu.memref_slice %arg7[%c0_i32_27] : memref<2x!tpu.dma_semaphore, #tpu.memory_space<semaphore_mem>> -> memref<1x!tpu.dma_semaphore, #tpu.memory_space<semaphore_mem>>
        %41 = tpu.memref_squeeze %40 : memref<1x!tpu.dma_semaphore, #tpu.memory_space<semaphore_mem>> -> memref<!tpu.dma_semaphore, #tpu.memory_space<semaphore_mem>>
        tpu.enqueue_dma source(%37 : memref<128xf32, #tpu.memory_space<any>>) target(%39 : memref<128xf32, #tpu.memory_space<vmem>>) target_semaphore(%41 : memref<!tpu.dma_semaphore, #tpu.memory_space<semaphore_mem>>)
      }
      %c256_i32_22 = arith.constant 256 : i32
    } else {
    }
    %c1_i32_5 = arith.constant 1 : i32
    %13 = arith.addi %arg1, %c1_i32_5 : i32
    %c1_i32_6 = arith.constant 1 : i32
    %14 = arith.cmpi slt, %13, %c1_i32_6 : i32
    %15 = arith.extui %14 : i1 to i32
    %c0_i32_7 = arith.constant 0 : i32
    %16 = arith.cmpi ne, %15, %c0_i32_7 : i32
    scf.if %16 {
      %c1_i32_17 = arith.constant 1 : i32
      %26 = arith.addi %arg1, %c1_i32_17 : i32
      %c1_i32_18 = arith.constant 1 : i32
      %27 = arith.addi %arg1, %c1_i32_18 : i32
      %c2_i32_19 = arith.constant 2 : i32
      %c0_i32_20 = arith.constant 0 : i32
      %28 = arith.cmpi eq, %c2_i32_19, %c0_i32_20 : i32
      %c1_i32_21 = arith.constant 1 : i32
      %29 = arith.select %28, %c1_i32_21, %c2_i32_19 : i32
      %30 = arith.remsi %27, %29 : i32
      %c0_i32_22 = arith.constant 0 : i32
      %31 = arith.cmpi ne, %30, %c0_i32_22 : i32
      %c0_i32_23 = arith.constant 0 : i32
      %32 = arith.cmpi slt, %30, %c0_i32_23 : i32
      %c0_i32_24 = arith.constant 0 : i32
      %33 = arith.cmpi slt, %29, %c0_i32_24 : i32
      %34 = arith.xori %32, %33 : i1
      %35 = arith.andi %34, %31 : i1
      %36 = arith.addi %30, %29 : i32
      %37 = arith.select %35, %36, %30 : i32
      %c256_i32_25 = arith.constant 256 : i32
      %38 = arith.muli %arg0, %c256_i32_25 : i32
      %c256_i32_26 = arith.constant 256 : i32
      %39 = arith.muli %26, %c256_i32_26 : i32
      %40 = arith.addi %38, %39 : i32
      %c0_i32_27 = arith.constant 0 : i32
      %c256_i32_28 = arith.constant 256 : i32
      %41 = arith.addi %c0_i32_27, %c256_i32_28 : i32
      %c1_i32_29 = arith.constant 1 : i32
      scf.for %arg8 = %c0_i32_27 to %41 step %c1_i32_29  : i32 {
        %c1_i32_31 = arith.constant 1 : i32
        %42 = arith.muli %arg8, %c1_i32_31 : i32
        %c0_i32_32 = arith.constant 0 : i32
        %43 = arith.addi %c0_i32_32, %42 : i32
        %44 = arith.addi %40, %43 : i32
        %45 = arith.index_cast %44 : i32 to index
        %46 = memref.load %arg2[%45] : memref<512xi32, #tpu.memory_space<smem>>
        %c0_i32_33 = arith.constant 0 : i32
        %c511_i32 = arith.constant 511 : i32
        %47 = arith.maxsi %c0_i32_33, %46 : i32
        %48 = arith.minsi %c511_i32, %47 : i32
        %c0_i32_34 = arith.constant 0 : i32
        %49 = tpu.memref_slice %arg3[%48, %c0_i32_34] : memref<512x128xf32, #tpu.memory_space<any>> -> memref<1x128xf32, #tpu.memory_space<any>>
        %50 = tpu.memref_squeeze %49 : memref<1x128xf32, #tpu.memory_space<any>> -> memref<128xf32, #tpu.memory_space<any>>
        %c0_i32_35 = arith.constant 0 : i32
        %51 = tpu.memref_slice %arg6[%37, %43, %c0_i32_35] : memref<2x256x128xf32, #tpu.memory_space<vmem>> -> memref<1x1x128xf32, #tpu.memory_space<vmem>>
        %52 = tpu.memref_squeeze %51 : memref<1x1x128xf32, #tpu.memory_space<vmem>> -> memref<128xf32, #tpu.memory_space<vmem>>
        %53 = tpu.memref_slice %arg7[%37] : memref<2x!tpu.dma_semaphore, #tpu.memory_space<semaphore_mem>> -> memref<1x!tpu.dma_semaphore, #tpu.memory_space<semaphore_mem>>
        %54 = tpu.memref_squeeze %53 : memref<1x!tpu.dma_semaphore, #tpu.memory_space<semaphore_mem>> -> memref<!tpu.dma_semaphore, #tpu.memory_space<semaphore_mem>>
        tpu.enqueue_dma source(%50 : memref<128xf32, #tpu.memory_space<any>>) target(%52 : memref<128xf32, #tpu.memory_space<vmem>>) target_semaphore(%54 : memref<!tpu.dma_semaphore, #tpu.memory_space<semaphore_mem>>)
      }
      %c256_i32_30 = arith.constant 256 : i32
    } else {
    }
    %c0_i32_8 = arith.constant 0 : i32
    %c256_i32 = arith.constant 256 : i32
    %17 = arith.addi %c0_i32_8, %c256_i32 : i32
    %c1_i32_9 = arith.constant 1 : i32
    scf.for %arg8 = %c0_i32_8 to %17 step %c1_i32_9  : i32 {
      %c1_i32_17 = arith.constant 1 : i32
      %26 = arith.muli %arg8, %c1_i32_17 : i32
      %c0_i32_18 = arith.constant 0 : i32
      %27 = arith.addi %c0_i32_18, %26 : i32
      %c0_i32_19 = arith.constant 0 : i32
      %c0_i32_20 = arith.constant 0 : i32
      %28 = tpu.memref_slice %arg3[%c0_i32_19, %c0_i32_20] : memref<512x128xf32, #tpu.memory_space<any>> -> memref<1x128xf32, #tpu.memory_space<any>>
      %29 = tpu.memref_squeeze %28 : memref<1x128xf32, #tpu.memory_space<any>> -> memref<128xf32, #tpu.memory_space<any>>
      %c0_i32_21 = arith.constant 0 : i32
      %30 = tpu.memref_slice %arg6[%9, %27, %c0_i32_21] : memref<2x256x128xf32, #tpu.memory_space<vmem>> -> memref<1x1x128xf32, #tpu.memory_space<vmem>>
      %31 = tpu.memref_squeeze %30 : memref<1x1x128xf32, #tpu.memory_space<vmem>> -> memref<128xf32, #tpu.memory_space<vmem>>
      %32 = tpu.memref_slice %arg7[%9] : memref<2x!tpu.dma_semaphore, #tpu.memory_space<semaphore_mem>> -> memref<1x!tpu.dma_semaphore, #tpu.memory_space<semaphore_mem>>
      %33 = tpu.memref_squeeze %32 : memref<1x!tpu.dma_semaphore, #tpu.memory_space<semaphore_mem>> -> memref<!tpu.dma_semaphore, #tpu.memory_space<semaphore_mem>>
      tpu.wait_dma2 semaphore(%33 : memref<!tpu.dma_semaphore, #tpu.memory_space<semaphore_mem>>) src(%29 : memref<128xf32, #tpu.memory_space<any>>) dst(%31 : memref<128xf32, #tpu.memory_space<vmem>>)
    }
    %c256_i32_10 = arith.constant 256 : i32
    %18 = arith.index_cast %9 : i32 to index
    %c0 = arith.constant 0 : index
    %c0_11 = arith.constant 0 : index
    %19 = vector.load %arg6[%18, %c0, %c0_11] : memref<2x256x128xf32, #tpu.memory_space<vmem>>, vector<1x256x128xf32>
    %20 = vector.shape_cast %19 : vector<1x256x128xf32> to vector<256x128xf32>
    %c0_12 = arith.constant 0 : index
    %c0_13 = arith.constant 0 : index
    %21 = vector.load %arg4[%c0_12, %c0_13] : memref<256x128xf32, #tpu.memory_space<vmem>>, vector<256x128xf32>
    %22 = arith.addf %20, %21 : vector<256x128xf32>
    %c0_14 = arith.constant 0 : index
    %c0_15 = arith.constant 0 : index
    %c0_16 = arith.constant 0 : index
    %23 = vector.load %arg5[%c0_14, %c0_15, %c0_16] : memref<1x256x128xf32, #tpu.memory_space<vmem>>, vector<1x256x128xf32>
    %24 = vector.shape_cast %23 : vector<1x256x128xf32> to vector<256x128xf32>
    %25 = vector.shape_cast %22 : vector<256x128xf32> to vector<1x256x128xf32>
    tpu.vector_store %arg5[%c0_14, %c0_15, %c0_16], %25 {strides = array<i32>} : memref<1x256x128xf32, #tpu.memory_space<vmem>>, vector<1x256x128xf32>,
    return
  }
  func.func @transform_1(%arg0: i32, %arg1: i32, %arg2: memref<512xi32, #tpu.memory_space<smem>>) -> (i32, i32) {
    %c0_i32 = arith.constant 0 : i32
    %c0_i32_0 = arith.constant 0 : i32
    return %arg1, %c0_i32 : i32, i32
  }
  func.func @transform_2(%arg0: i32, %arg1: i32, %arg2: memref<512xi32, #tpu.memory_space<smem>>) -> (i32, i32, i32) {
    %c0_i32 = arith.constant 0 : i32
    %c0_i32_0 = arith.constant 0 : i32
    return %arg0, %arg1, %c0_i32 : i32, i32, i32
  }
}

</mosaic_0001>

<bundles_post_ra>
// kernel: tpu_custom_call.1
= control target key start
LH: loop header
LB: loop body
LE: loop exit
PB: predicated region body
PF: predicated region fallthrough
CT: control target
= control target key end

     0   :  { %s783_s12 = smov [#allocation5]   ;;  %s1005_s0 = inlined_call_operand.hbm [shape: s32[512], index: 0, kind: input, shape index: {}]   ;;  %s1006_s1 = inlined_call_operand.hbm [shape: f32[512,128], index: 1, kind: input, shape index: {}]   ;;  %s1007_s2 = inlined_call_operand.hbm [shape: f32[256,128], index: 2, kind: input, shape index: {}]   ;;  %s1008_s3 = inlined_call_operand.hbm [shape: f32[2,256,128], index: 3, kind: output, shape index: {}]  }
   0x1   :  { %9 = dma.hbm_to_smem %s1005_s0, 64, %s783_s12, [#allocation4] }
   0x2   :  { %739 = dma.done.wait [#allocation4], 64 }
   0x3   :  { %740 = vsyncadd [#allocation4], 4294967232 }
   0x4   :  { %11 = sfence }
   0x5   :  { %12 = vsyncpa [#allocation7], 0 }
   0x6   :  { %13 = vsyncpa [#allocation8], 0 }
   0x7   :  { %15 = vsyncpa [#allocation8 + $0x1], 0  ;;  %s814_s15 = smov 0   ;;  %s816_s16 = smov 0  }
   0x8   :  { %s818_s17 = smov 0   ;;  %s820_s18 = smov 0  }
   0x9   :  { %s822_s19 = smov 0   ;;  %s824_s20 = smov 0  }
   0xa LB: > { %s502_s0 = sadd.s32 4294967295, %s773_s20   ;;  %s503_s21 = sadd.s32 4294967294, %s773_s20   ;;  %s773_s20 = sphi %s824_s20, %s21_s20   ;;  %s769_s19 = sphi %s822_s19, %s1017_s19   ;;  %s765_s18 = sphi %s820_s18, %s1016_s18   ;;  %s761_s17 = sphi %s818_s17, %s1015_s17   ;;  %s757_s16 = sphi %s816_s16, %s1014_s16   ;;  %s753_s15 = sphi %s814_s15, %s1013_s15  }
   0xb   : > { %s33_s22 = sadd.s32 1, %s769_s19  ;;  %s68_s23 = sadd.s32 1, %s761_s17 }
   0xc   : > { %p35_p0 = scmp.ge.s32.totalorder %s33_s22, 2  ;;  %p78_p1 = scmp.ne.s32.totalorder %s761_s17, %s757_s16 }
   0xd   : > { %p79_p2 = scmp.eq.s32.totalorder %s502_s0, 1  ;;  %p84_p3 = scmp.ne.s32.totalorder %s757_s16, %s753_s15 }
   0xe   : > { %s1019_s22 = smov (%p35_p0, %s33_s22), 0  ;;  %p85_p5 = scmp.eq.s32.totalorder %s503_s21, 1 }
   0xf   : > { %p854_p4 = por %p79_p2, %p78_p1  ;;  %s63_s25 = ssub.s32 %s769_s19, %s1019_s22 }
  0x10   : > { %p504_p6 = scmp.ge.s32.totalorder %s773_s20, 1  ;;  %p66_p7 = scmp.eq.s32.totalorder %s63_s25, 0 }
  0x11   : > { %p861_p8 = por %p85_p5, %p84_p3  ;;  %p92_p9 = scmp.lt.s32.totalorder %s773_s20, 3 }
  0x12   : > { %s867_s27 = scalar_select %p66_p7, %s761_s17, %s68_s23  }
  0x13   : > { %p869_p10 = pnand %p504_p6, %p92_p9  ;;  %p873_p11 = scmp.eq.s32.totalorder %s502_s0, 0 }
  0x14   : > { %s784_s30 = smov [#allocation6]  }
  0x15   : > { %p544_p12 = pneg %p869_p10  ;;  %s107_s4 = sshll.u32 %s784_s30, 4  ;;  %s108_s4 = int_to_ptr.vmem [resolvable:$true] %s107_s4 }
  0x16   : > { %s644_s5 = scalar_lea.vmem %s108_s4, 4096  ;;  %p652_p5 = scmp.lt.s32.totalorder %s108_s4, %s108_s4 }
  0x17   : > { %p545_p13 = pnand %p873_p11, %p544_p12  ;;  %p645_p1 = scmp.ne.s32.totalorder %s108_s4, %s644_s5 }
  0x18   : > { %p653_p6 = scmp.lt.s32.totalorder %s644_s5, %s644_s5 }
  0x19   : > { %p635_p0 = pneg %p545_p13 }
  0x1a   : > { %p654_p7 = por %p653_p6, %p652_p5 }
  0x1b   : > { %p647_p2 = pnand %p645_p1, %p635_p0 }
  0x1d   : > { %p648_p3 = pneg %p647_p2 }
  0x1f   : > { %p655_p9 = pnand %p654_p7, %p648_p3 }
  0x21   : > { %658 = shalt.err (!%p655_p9)
}
  0x22   : > { %s785_s6 = smov 128   ;;  %s786_s7 = smov 8  }
  0x23   : > { %547 = dma.hbm_to_vmem [thread:$0]  (!%p545_p13), %s1007_s2, 4096, %s108_s4, [#allocation7], %s785_s6, %s785_s6, %s786_s7  }
  0x24   : > { %123 = sbr.rel (%p869_p10) target bundleno = 129 (0x81), region = 24 }
  0x29   : > { %742 = dma.done.wait (%p873_p11), [#allocation7], 4096  }
  0x2a   : > { %744 = vsyncadd (%p873_p11), [#allocation7], 4294963200  ;;  %s135_s10 = sand.u32 1, %s757_s16   ;;  %s509_s11 = sshll.u32 %s765_s18, 8 }
  0x2b   : > { %s508_s12 = sshll.u32 %s135_s10, 8  ;;  %s896_s14 = smov 0  }
  0x2c   : > { %s894_s13 = scalar_lea.vmem [#allocation9], %s508_s12 }
  0x2d LB: >> { %s163_s0 = sadd.s32 %s777_s14, %s509_s11  ;;  %s171_s23 = scalar_lea.vmem [#allocation2], %s777_s14  ;;  %s777_s14 = sphi %s896_s14, %s162_s14  }
  0x2e   : >> { %s164_s21 = sld [smem:[#allocation5 + %s163_s0]]  ;;  %s179_s25 = sshll.u32 %s171_s23, 4  ;;  %s180_s25 = int_to_ptr.vmem [resolvable:$true] %s179_s25 }
  0x2f   : >> { %s661_s8 = scalar_lea.hbm %s1006_s1, 8192 }
  0x34   : >> { %p165_p10 = scmp.gt.s32.totalorder %s164_s21, 0  ;;  %p510_p11 = scmp.lt.s32.totalorder %s164_s21, 511 }
  0x36   : >> { %s1021_s21 = smov (!%p165_p10, %s164_s21), 0 }
  0x37   : >> { %s1023_s21 = smov (!%p510_p11, %s1021_s21), 511 }
  0x38   : >> { %s515_s28 = sshll.u32 %s1023_s21, 4 }
  0x39   : >> { %s170_s4 = scalar_lea.hbm %s1006_s1, %s515_s28 }
  0x3a   : >> { %s659_s5 = scalar_lea.hbm %s170_s4, 16  ;;  %p662_p13 = scmp.lt.s32.totalorder %s170_s4, %s1006_s1 }
  0x3b   : >> { %p660_p12 = scmp.ne.s32.totalorder %s170_s4, %s659_s5  ;;  %p663_p0 = scmp.lt.s32.totalorder %s661_s8, %s659_s5 }
  0x3d   : >> { %p664_p1 = por %p663_p0, %p662_p13 }
  0x3f   : >> { %p665_p2 = pnand %p664_p1, %p660_p12 }
  0x41   : >> { %668 = shalt.err (!%p665_p2)  }
  0x42   : >> { %s669_s0 = scalar_lea.vmem %s180_s25, 16  ;;  %s787_s21 = smov [#allocation2]  }
  0x43   : >> { %p670_p3 = scmp.ne.s32.totalorder %s180_s25, %s669_s0  ;;  %s671_s23 = sshll.u32 %s787_s21, 4  ;;  %s672_s23 = int_to_ptr.vmem [resolvable:$false] %s671_s23 }
  0x44   : >> { %s673_s28 = scalar_lea.vmem %s672_s23, 8192  ;;  %p674_p5 = scmp.lt.s32.totalorder %s180_s25, %s672_s23 }
  0x45   : >> { %p675_p6 = scmp.lt.s32.totalorder %s673_s28, %s669_s0 }
  0x47   : >> { %p676_p7 = por %p675_p6, %p674_p5 }
  0x49   : >> { %p677_p9 = pnand %p676_p7, %p670_p3 }
  0x4b   : >> { %680 = shalt.err (!%p677_p9)  }
  0x4c   : >> { %182 = dma.hbm_to_vmem [thread:$0]  %s170_s4, 16, %s180_s25, [#allocation3] }
  0x4d   : >> { %s162_s14 = sadd.s32 1, %s777_s14  }
  0x4e   : >> { %p159_p10 = scmp.ge.s32.totalorder %s162_s14, 256  }
  0x4f   : > { %s779_s29 = smov (%p159_p10), 0  }
  0x50   : > { %161 = sbr.rel (!%p159_p10) target bundleno = 45 (0x2d), region = 107 }
  0x55 LB: >> { %745 = dma.done.wait [#allocation3], 16  ;;  %s781_s29 = sphi %s779_s29, %s237_s29  }
  0x56   : >> { %746 = vsyncadd [#allocation3], 4294967280  ;;  %s237_s29 = sadd.s32 1, %s781_s29  }
  0x57   : >> { %p234_p11 = scmp.ge.s32.totalorder %s237_s29, 256  }
  0x58   : > { %v243_v0 = vld [vmem:[#allocation2] sm:$0xff] (%p234_p11)  ;;  %v244_v2 = vld [vmem:[#allocation2 + $0x8] sm:$0xff] (%p234_p11)  ;;  %v245_v5 = vld [vmem:[#allocation2 + $0x10] sm:$0xff] (%p234_p11)  ;;  %s537_s11 = sshll.u32 (%p234_p11), %s765_s18, 12  ;;  %s387_s14 = sshll.u32 (%p234_p11), %s894_s13, 4  ;;  %s952_s14 = int_to_ptr.vmem [resolvable:$true] %s387_s14 }
  0x59   : > { %236 = sbr.rel (!%p234_p11) target bundleno = 85 (0x55), region = 129  ;;  %v275_v1 = vld [vmem:[#allocation6] sm:$0xff] (%p234_p11)  ;;  %v276_v4 = vld [vmem:[#allocation6 + $0x8] sm:$0xff] (%p234_p11)  ;;  %v277_v6 = vld [vmem:[#allocation6 + $0x10] sm:$0xff] (%p234_p11)  ;;  %s950_s30 = scalar_lea.hbm (%p234_p11), %s1008_s3, %s537_s11 }
  0x5a   : > { %v307_v3 = vadd.f32 (%p234_p11), %v275_v1, %v243_v0  ;;  %v308_v7 = vadd.f32 (%p234_p11), %v276_v4, %v244_v2  ;;  %v309_v8 = vadd.f32 (%p234_p11), %v277_v6, %v245_v5  ;;  %v246_v9 = vld [vmem:[#allocation2 + $0x18] sm:$0xff] (%p234_p11)  ;;  %v247_v11 = vld [vmem:[#allocation2 + $0x20] sm:$0xff] (%p234_p11)  ;;  %v248_v14 = vld [vmem:[#allocation2 + $0x28] sm:$0xff] (%p234_p11)  ;;  %s960_s4 = scalar_lea.sflag (%p234_p11), [#allocation8], %s135_s10  ;;  %s681_s5 = scalar_lea.vmem (%p234_p11), %s952_s14, 4096 }
  0x5b   : > { %v278_v10 = vld [vmem:[#allocation6 + $0x18] sm:$0xff] (%p234_p11)  ;;  %v279_v13 = vld [vmem:[#allocation6 + $0x20] sm:$0xff] (%p234_p11)  ;;  %v280_v15 = vld [vmem:[#allocation6 + $0x28] sm:$0xff] (%p234_p11)  ;;  %p682_p12 = scmp.ne.s32.totalorder (%p234_p11), %s952_s14, %s681_s5  ;;  %s788_s6 = smov (%p234_p11), [#allocation9]  }
  0x5c   : > { %339 = vst [vmem:[%s894_s13] sm:$0xff] (%p234_p11), %v307_v3  ;;  %v310_v12 = vadd.f32 (%p234_p11), %v278_v10, %v246_v9  ;;  %340 = vst [vmem:[%s894_s13 + $0x8] sm:$0xff] (%p234_p11), %v308_v7  ;;  %v311_v16 = vadd.f32 (%p234_p11), %v279_v13, %v247_v11  ;;  %v312_v17 = vadd.f32 (%p234_p11), %v280_v15, %v248_v14  ;;  %v249_v18 = vld [vmem:[#allocation2 + $0x30] sm:$0xff] (%p234_p11)  ;;  %v250_v20 = vld [vmem:[#allocation2 + $0x38] sm:$0xff] (%p234_p11)  ;;  %s685_s7 = sshll.u32 (%p234_p11), %s788_s6, 4  ;;  %s686_s7 = int_to_ptr.vmem [resolvable:$false] %s685_s7 }
  0x5d   : > { %341 = vst [vmem:[%s894_s13 + $0x10] sm:$0xff] (%p234_p11), %v309_v8  ;;  %v281_v19 = vld [vmem:[#allocation6 + $0x30] sm:$0xff] (%p234_p11)  ;;  %v282_v22 = vld [vmem:[#allocation6 + $0x38] sm:$0xff] (%p234_p11)  ;;  %v251_v23 = vld [vmem:[#allocation2 + $0x40] sm:$0xff] (%p234_p11)  ;;  %p683_p13 = pnand (%p234_p11), %p682_p12, %p854_p4  ;;  %s687_s8 = scalar_lea.vmem (%p234_p11), %s686_s7, 8192 }
  0x5e   : > { %342 = vst [vmem:[%s894_s13 + $0x18] sm:$0xff] %v310_v12  ;;  %v313_v21 = vadd.f32 %v281_v19, %v249_v18  ;;  %v283_v24 = vld [vmem:[#allocation6 + $0x40] sm:$0xff]  ;;  %343 = vst [vmem:[%s894_s13 + $0x20] sm:$0xff] %v311_v16  ;;  %v314_v25 = vadd.f32 %v282_v22, %v250_v20  ;;  %v252_v27 = vld [vmem:[#allocation2 + $0x48] sm:$0xff]  ;;  %p688_p1 = scmp.lt.s32.totalorder %s952_s14, %s686_s7  ;;  %p689_p2 = scmp.lt.s32.totalorder %s687_s8, %s681_s5 }
  0x5f   : > { %344 = vst [vmem:[%s894_s13 + $0x28] sm:$0xff] %v312_v17  ;;  %v315_v26 = vadd.f32 %v283_v24, %v251_v23  ;;  %v284_v28 = vld [vmem:[#allocation6 + $0x48] sm:$0xff]  ;;  %v253_v29 = vld [vmem:[#allocation2 + $0x50] sm:$0xff]  ;;  %v254_v32 = vld [vmem:[#allocation2 + $0x58] sm:$0xff]  ;;  %p684_p0 = pneg %p683_p13 }
  0x60   : > { %345 = vst [vmem:[%s894_s13 + $0x30] sm:$0xff] %v313_v21  ;;  %v316_v30 = vadd.f32 %v284_v28, %v252_v27  ;;  %v285_v31 = vld [vmem:[#allocation6 + $0x50] sm:$0xff]  ;;  %v286_v33 = vld [vmem:[#allocation6 + $0x58] sm:$0xff]  ;;  %346 = vst [vmem:[%s894_s13 + $0x38] sm:$0xff] %v314_v25  ;;  %p690_p3 = por %p689_p2, %p688_p1 }
  0x61   : > { %347 = vst [vmem:[%s894_s13 + $0x40] sm:$0xff] %v315_v26  ;;  %v317_v34 = vadd.f32 %v285_v31, %v253_v29  ;;  %v318_v35 = vadd.f32 %v286_v33, %v254_v32  ;;  %v255_v36 = vld [vmem:[#allocation2 + $0x60] sm:$0xff]  ;;  %v256_v38 = vld [vmem:[#allocation2 + $0x68] sm:$0xff]  ;;  %v257_v41 = vld [vmem:[#allocation2 + $0x70] sm:$0xff] }
  0x62   : > { %v287_v37 = vld [vmem:[#allocation6 + $0x60] sm:$0xff]  ;;  %348 = vst [vmem:[%s894_s13 + $0x48] sm:$0xff] %v316_v30  ;;  %v288_v40 = vld [vmem:[#allocation6 + $0x68] sm:$0xff]  ;;  %v289_v42 = vld [vmem:[#allocation6 + $0x70] sm:$0xff]  ;;  %p691_p5 = pnand %p690_p3, %p684_p0 }
  0x63   : > { %v319_v39 = vadd.f32 %v287_v37, %v255_v36  ;;  %349 = vst [vmem:[%s894_s13 + $0x50] sm:$0xff] %v317_v34  ;;  %350 = vst [vmem:[%s894_s13 + $0x58] sm:$0xff] %v318_v35  ;;  %v320_v43 = vadd.f32 %v288_v40, %v256_v38  ;;  %v321_v44 = vadd.f32 %v289_v42, %v257_v41  ;;  %v258_v45 = vld [vmem:[#allocation2 + $0x78] sm:$0xff]  ;;  %v259_v47 = vld [vmem:[#allocation2 + $0x80] sm:$0xff] }
  0x64   : > { %v290_v46 = vld [vmem:[#allocation6 + $0x78] sm:$0xff]  ;;  %v291_v49 = vld [vmem:[#allocation6 + $0x80] sm:$0xff]  ;;  %v260_v50 = vld [vmem:[#allocation2 + $0x88] sm:$0xff] }
  0x65   : > { %351 = vst [vmem:[%s894_s13 + $0x60] sm:$0xff] %v319_v39  ;;  %v322_v48 = vadd.f32 %v290_v46, %v258_v45  ;;  %v292_v51 = vld [vmem:[#allocation6 + $0x88] sm:$0xff]  ;;  %352 = vst [vmem:[%s894_s13 + $0x68] sm:$0xff] %v320_v43  ;;  %v323_v52 = vadd.f32 %v291_v49, %v259_v47  ;;  %v261_v54 = vld [vmem:[#allocation2 + $0x90] sm:$0xff] }
  0x66   : > { %353 = vst [vmem:[%s894_s13 + $0x70] sm:$0xff] %v321_v44  ;;  %v324_v53 = vadd.f32 %v292_v51, %v260_v50  ;;  %v293_v55 = vld [vmem:[#allocation6 + $0x90] sm:$0xff]  ;;  %v262_v56 = vld [vmem:[#allocation2 + $0x98] sm:$0xff]  ;;  %v263_v59 = vld [vmem:[#allocation2 + $0xa0] sm:$0xff] }
  0x67   : > { %354 = vst [vmem:[%s894_s13 + $0x78] sm:$0xff] %v322_v48  ;;  %v325_v57 = vadd.f32 %v293_v55, %v261_v54  ;;  %v294_v58 = vld [vmem:[#allocation6 + $0x98] sm:$0xff]  ;;  %v295_v60 = vld [vmem:[#allocation6 + $0xa0] sm:$0xff]  ;;  %355 = vst [vmem:[%s894_s13 + $0x80] sm:$0xff] %v323_v52 }
  0x68   : > { %356 = vst [vmem:[%s894_s13 + $0x88] sm:$0xff] %v324_v53  ;;  %v326_v61 = vadd.f32 %v294_v58, %v262_v56  ;;  %v327_v62 = vadd.f32 %v295_v60, %v263_v59  ;;  %v264_v63 = vld [vmem:[#allocation2 + $0xa8] sm:$0xff]  ;;  %v265_v1 = vld [vmem:[#allocation2 + $0xb0] sm:$0xff]  ;;  %v266_v4 = vld [vmem:[#allocation2 + $0xb8] sm:$0xff] }
  0x69   : > { %v296_v0 = vld [vmem:[#allocation6 + $0xa8] sm:$0xff]  ;;  %357 = vst [vmem:[%s894_s13 + $0x90] sm:$0xff] %v325_v57  ;;  %v297_v3 = vld [vmem:[#allocation6 + $0xb0] sm:$0xff]  ;;  %v298_v5 = vld [vmem:[#allocation6 + $0xb8] sm:$0xff] }
  0x6a   : > { %v328_v2 = vadd.f32 %v296_v0, %v264_v63  ;;  %358 = vst [vmem:[%s894_s13 + $0x98] sm:$0xff] %v326_v61  ;;  %359 = vst [vmem:[%s894_s13 + $0xa0] sm:$0xff] %v327_v62  ;;  %v329_v6 = vadd.f32 %v297_v3, %v265_v1  ;;  %v330_v7 = vadd.f32 %v298_v5, %v266_v4  ;;  %v267_v8 = vld [vmem:[#allocation2 + $0xc0] sm:$0xff]  ;;  %v268_v10 = vld [vmem:[#allocation2 + $0xc8] sm:$0xff] }
  0x6b   : > { %v299_v9 = vld [vmem:[#allocation6 + $0xc0] sm:$0xff]  ;;  %v300_v12 = vld [vmem:[#allocation6 + $0xc8] sm:$0xff]  ;;  %v269_v13 = vld [vmem:[#allocation2 + $0xd0] sm:$0xff] }
  0x6c   : > { %360 = vst [vmem:[%s894_s13 + $0xa8] sm:$0xff] %v328_v2  ;;  %v331_v11 = vadd.f32 %v299_v9, %v267_v8  ;;  %v301_v14 = vld [vmem:[#allocation6 + $0xd0] sm:$0xff]  ;;  %361 = vst [vmem:[%s894_s13 + $0xb0] sm:$0xff] %v329_v6  ;;  %v332_v15 = vadd.f32 %v300_v12, %v268_v10  ;;  %v270_v17 = vld [vmem:[#allocation2 + $0xd8] sm:$0xff] }
  0x6d   : > { %362 = vst [vmem:[%s894_s13 + $0xb8] sm:$0xff] %v330_v7  ;;  %v333_v16 = vadd.f32 %v301_v14, %v269_v13  ;;  %v302_v18 = vld [vmem:[#allocation6 + $0xd8] sm:$0xff]  ;;  %v271_v19 = vld [vmem:[#allocation2 + $0xe0] sm:$0xff]  ;;  %v272_v22 = vld [vmem:[#allocation2 + $0xe8] sm:$0xff] }
  0x6e   : > { %363 = vst [vmem:[%s894_s13 + $0xc0] sm:$0xff] %v331_v11  ;;  %v334_v20 = vadd.f32 %v302_v18, %v270_v17  ;;  %v303_v21 = vld [vmem:[#allocation6 + $0xe0] sm:$0xff]  ;;  %v304_v23 = vld [vmem:[#allocation6 + $0xe8] sm:$0xff]  ;;  %364 = vst [vmem:[%s894_s13 + $0xc8] sm:$0xff] %v332_v15 }
  0x6f   : > { %365 = vst [vmem:[%s894_s13 + $0xd0] sm:$0xff] %v333_v16  ;;  %v335_v24 = vadd.f32 %v303_v21, %v271_v19  ;;  %v336_v25 = vadd.f32 %v304_v23, %v272_v22  ;;  %v273_v26 = vld [vmem:[#allocation2 + $0xf0] sm:$0xff]  ;;  %v274_v28 = vld [vmem:[#allocation2 + $0xf8] sm:$0xff] }
  0x70   : > { %v305_v27 = vld [vmem:[#allocation6 + $0xf0] sm:$0xff]  ;;  %366 = vst [vmem:[%s894_s13 + $0xd8] sm:$0xff] %v334_v20  ;;  %v306_v30 = vld [vmem:[#allocation6 + $0xf8] sm:$0xff] }
  0x71   : > { %v337_v29 = vadd.f32 %v305_v27, %v273_v26  ;;  %367 = vst [vmem:[%s894_s13 + $0xe0] sm:$0xff] %v335_v24  ;;  %368 = vst [vmem:[%s894_s13 + $0xe8] sm:$0xff] %v336_v25  ;;  %v338_v31 = vadd.f32 %v306_v30, %v274_v28 }
  0x73   : > { %369 = vst [vmem:[%s894_s13 + $0xf0] sm:$0xff] %v337_v29  ;;  %370 = vst [vmem:[%s894_s13 + $0xf8] sm:$0xff] %v338_v31 }
  0x74   : > { %694 = shalt.err (!%p691_p5)
}
  0x75   : > { %s695_s10 = scalar_lea.hbm %s950_s30, 4096  ;;  %s699_s12 = scalar_lea.hbm %s1008_s3, 8192 }
  0x76   : > { %p696_p6 = scmp.ne.s32.totalorder %s950_s30, %s695_s10  ;;  %p700_p10 = scmp.lt.s32.totalorder %s950_s30, %s1008_s3 }
  0x77   : > { %p701_p11 = scmp.lt.s32.totalorder %s699_s12, %s695_s10 }
  0x78   : > { %p697_p7 = pnand %p696_p6, %p854_p4 }
  0x79   : > { %p702_p12 = por %p701_p11, %p700_p10 }
  0x7a   : > { %p698_p9 = pneg %p697_p7 }
  0x7c   : > { %p703_p13 = pnand %p702_p12, %p698_p9 }
  0x7e   : > { %706 = shalt.err (!%p703_p13)
}
  0x7f   : > { %s789_s23 = smov 128   ;;  %s790_s28 = smov 8  }
  0x80   : > { %542 = dma.vmem_to_hbm [thread:$0]  (%p854_p4), %s952_s14, 4096, %s950_s30, %s960_s4, %s789_s23, %s789_s23, %s790_s28  }
  0x81 PF: > { %p554_p0 = scmp.ge.s32.totalorder %s773_s20, 2  ;;  %s402_s29 = sand.u32 1, %s753_s15  }
  0x82   : > { %s403_s11 = scalar_lea.sflag [#allocation8], %s402_s29 }
  0x83   : > { %p549_p1 = pnand %p554_p0, %p861_p8 }
  0x85   : > { %p550_p2 = pneg %p549_p1 }
  0x87   : > { %748 = dma.done.wait (%p550_p2), %s403_s11, 4096  }
  0x88   : > { %750 = vsyncadd (%p550_p2), %s403_s11, 4294963200  ;;  %s21_s20 = sadd.s32 1, %s773_s20   ;;  %s1013_s15 = smov %s757_s16 }
  0x89   : > { %p18_p3 = scmp.ge.s32.totalorder %s21_s20, 4   ;;  %s1014_s16 = smov %s761_s17 }
  0x8a   : > { %s1015_s17 = smov %s867_s27  ;;  %s1016_s18 = smov %s769_s19 }
  0x8b   : > { %s1017_s19 = smov %s1019_s22  ;;  %20 = sbr.rel (!%p18_p3) target bundleno = 10 (0xa), region = 140 }
  0x90   :  { %408 = vsyncpa [#allocation7], 1 }
  0x91   :  { %410 = vsyncpa [#allocation7 + $0x1], 1 }
  0x92   :  { %411 = vsyncpa [#allocation8], 1 }
  0x93   :  { %413 = vsyncpa [#allocation8 + $0x1], 1 }
  0x94   :  { %414 = vsyncmov [#allocation3] }
  0x97   :  { %s415_s24 = vpop.sfrf %414 }
  0x98   :  { %p529_p4 = scmp.ne.s32.totalorder %s415_s24, 0 }
  0x9a   :  { %419 = shalt.err (%p529_p4)  }
  0x9b   :  { %421 = vsyncmov [#allocation3 + $0x1] }
  0x9e   :  { %s422_s26 = vpop.sfrf %421 }
  0x9f   :  { %p530_p8 = scmp.ne.s32.totalorder %s422_s26, 0 }
  0xa1   :  { %426 = shalt.err (%p530_p8)  }

</bundles_post_ra>
